<compile_context>
chip_gen: v7x
topology: tpu7x:2x2x1
jax: 0.10.0
libtpu: 0.0.40
codegen_flags: <defaults>
</compile_context>

<pallas_src>
import jax
import jax.numpy as jnp
from jax.experimental import pallas as pl
from jax.experimental.pallas import tpu as pltpu


# ----------------------------- kernels --------------------------------------

def ffn_kernel_resident(x_ref, w1_ref, b1_ref, w2_ref, b2_ref, o_ref):
    # Whole pf tile resident: no accumulator, write the output directly.
    # x_ref: (tm, hid) bf16   w1_ref: (hid, pf) bf16   b1_ref: (1, pf) f32
    # w2_ref: (pf, hid) bf16  b2_ref: (1, hid) f32     o_ref: (tm, hid)
    h = jnp.dot(x_ref[...], w1_ref[...], preferred_element_type=jnp.float32)
    h = jnp.maximum(h + b1_ref[...], 0.0)
    # dropout == identity at inference.
    out = jnp.dot(h.astype(w2_ref.dtype), w2_ref[...],
                  preferred_element_type=jnp.float32)
    o_ref[...] = (out + b2_ref[...]).astype(o_ref.dtype)


def ffn_kernel_streamed(x_ref, w1_ref, b1_ref, w2_ref, b2_ref, o_ref, acc_ref):
    # pf streamed along grid axis 1; f32 accumulator resident across it.
    # x_ref: (tm, hid) bf16   w1_ref: (hid, tpf)   b1_ref: (1, tpf)
    # w2_ref: (tpf, hid)      b2_ref: (1, hid)     o_ref/acc_ref: (tm, hid)
    j = pl.program_id(1)

    @pl.when(j == 0)
    def _init():
        acc_ref[...] = jnp.zeros_like(acc_ref)

    h = jnp.dot(x_ref[...], w1_ref[...], preferred_element_type=jnp.float32)
    h = jnp.maximum(h + b1_ref[...], 0.0)
    # dropout == identity at inference.
    acc_ref[...] += jnp.dot(h.astype(w2_ref.dtype), w2_ref[...],
                            preferred_element_type=jnp.float32)

    @pl.when(j == pl.num_programs(1) - 1)
    def _finalize():
        o_ref[...] = (acc_ref[...] + b2_ref[...]).astype(o_ref.dtype)


# ------------------------- planning helpers ----------------------------------

def _round_up(x, m):
    return ((x + m - 1) // m) * m


def _vmem_budget_bytes():
    """Generation-aware usable-VMEM budget (v7x ~48 MiB, v5e/v6e ~108 MiB)."""
    try:
        cap = int(pltpu.get_tpu_info().vmem_capacity_bytes)
    except Exception:
        cap = 64 << 20  # conservative fallback: assume v7x-sized VMEM
    return max(min(cap - (16 << 20), int(cap * 0.85)), 24 << 20)


def _plan_tiles(hid, pf, x_sz, out_sz, w_sz, budget):
    """Pick (tm_cap, tpf, resident) so the double-buffered footprint fits."""
    def footprint(tm, tpf, resident):
        b = (2 * tm * hid * x_sz            # x tiles (double-buffered)
             + 2 * hid * tpf * w_sz         # W1 tiles
             + 2 * tpf * 4 + 2 * hid * 4    # biases (f32)
             + 2 * tpf * hid * w_sz         # W2 tiles
             + 2 * tm * hid * out_sz        # out tiles
             + tm * tpf * (4 + w_sz))       # fc_1 intermediate (f32 + bf16)
        if not resident:
            b += tm * hid * 4               # f32 accumulator scratch
        return b

    tms = (1024, 768, 512, 384, 256, 128)

    # 1) Resident: whole pf in one tile; weights DMA'd once for the entire grid.
    for tm in tms:
        if footprint(tm, pf, True) <= budget:
            return tm, pf, True

    # 2) Streamed pf: maximize tm (intensity ~ tm flop / streamed weight byte),
    #    then tpf (fewer reduction steps, bigger weight DMAs).
    best = None
    for tm in tms:
        for tpf in (2048, 1536, 1024, 768, 512, 384, 256, 128):
            if tpf >= pf:
                continue
            if footprint(tm, tpf, False) <= budget:
                key = (min(tpf, 512), tm, tpf)
                if best is None or key > best[0]:
                    best = (key, tm, tpf)
    if best is not None:
        return best[1], best[2], False
    return 128, 128, False                   # last-resort tiny tiles


# ------------------------------ factory --------------------------------------

def make_positionwise_feedforward(w1, b1, w2, b2, *,
                                  compute_dtype=jnp.bfloat16,
                                  out_dtype=None,
                                  force_tiles=None):
    """Prepare (cast + pad) the FFN weights once; returns apply(x)."""
    hid, pf = w1.shape
    assert w2.shape == (pf, hid) and b1.shape == (pf,) and b2.shape == (hid,)

    c_sz = jnp.dtype(compute_dtype).itemsize
    o_sz = jnp.dtype(out_dtype).itemsize if out_dtype is not None else 4
    budget = _vmem_budget_bytes()

    if force_tiles is not None:               # testing hook
        tm_cap, tpf, resident = force_tiles
    else:
        tm_cap, tpf, resident = _plan_tiles(hid, pf, c_sz, o_sz, c_sz, budget)

    # Cast weights to the MXU-native dtype ONCE; zero-pad pf when streamed so
    # every pf tile is full-size (padding is numerically inert: relu(0)=0 and
    # the padded W2 rows are zero).
    pf_pad = pf if resident else _round_up(pf, tpf)
    w1c = w1.astype(compute_dtype)
    w2c = w2.astype(compute_dtype)
    b1c = b1.reshape(1, pf).astype(jnp.float32)
    b2c = b2.reshape(1, hid).astype(jnp.float32)
    if pf_pad != pf:
        w1c = jnp.pad(w1c, ((0, 0), (0, pf_pad - pf)))
        b1c = jnp.pad(b1c, ((0, 0), (0, pf_pad - pf)))
        w2c = jnp.pad(w2c, ((0, pf_pad - pf), (0, 0)))
    n_pf = pf_pad // tpf

    def apply(x):
        batch, seq, hid_ = x.shape
        assert hid_ == hid
        M = batch * seq
        odt = out_dtype if out_dtype is not None else x.dtype

        x2d = x.reshape(M, hid)               # free reshape, no pad copy
        if x2d.dtype != compute_dtype:
            x2d = x2d.astype(compute_dtype)   # bf16 activations end-to-end

        # Row tile: as large as planned, but keep >= 2 M blocks when possible
        # so the "parallel" axis feeds both TensorCores on dual-TC chips.
        tm = min(tm_cap, _round_up(M, 8))
        if M > 8 and pl.cdiv(M, tm) < 2:
            tm = _round_up(pl.cdiv(M, 2), 8)
        n_m = pl.cdiv(M, tm)

        weight_bytes = hid * pf_pad * (w1c.dtype.itemsize + w2c.dtype.itemsize)
        cost = pl.CostEstimate(
            flops=4 * M * hid * pf,
            transcendentals=0,
            bytes_accessed=(M * hid * (x2d.dtype.itemsize
                                       + jnp.dtype(odt).itemsize)
                            + weight_bytes * (n_m if n_pf > 1 else 1)
                            + (pf_pad + hid) * 4))

        if n_pf == 1:
            kernel = ffn_kernel_resident
            grid_spec = pltpu.PrefetchScalarGridSpec(
                num_scalar_prefetch=0,
                grid=(n_m,),
                in_specs=[
                    pl.BlockSpec((tm, hid), lambda i: (i, 0)),   # x row tile
                    pl.BlockSpec((hid, tpf), lambda i: (0, 0)),  # W1 (resident)
                    pl.BlockSpec((1, tpf),   lambda i: (0, 0)),  # b1
                    pl.BlockSpec((tpf, hid), lambda i: (0, 0)),  # W2 (resident)
                    pl.BlockSpec((1, hid),   lambda i: (0, 0)),  # b2
                ],
                out_specs=pl.BlockSpec((tm, hid), lambda i: (i, 0)),
                scratch_shapes=[],
            )
            dims = ("parallel",)
        else:
            kernel = ffn_kernel_streamed
            grid_spec = pltpu.PrefetchScalarGridSpec(
                num_scalar_prefetch=0,
                grid=(n_m, n_pf),                 # M parallel, pf reduction last
                in_specs=[
                    pl.BlockSpec((tm, hid), lambda i, j: (i, 0)),   # x row tile
                    pl.BlockSpec((hid, tpf), lambda i, j: (0, j)),  # W1 slice
                    pl.BlockSpec((1, tpf),   lambda i, j: (0, j)),  # b1 slice
                    pl.BlockSpec((tpf, hid), lambda i, j: (j, 0)),  # W2 slice
                    pl.BlockSpec((1, hid),   lambda i, j: (0, 0)),  # b2
                ],
                out_specs=pl.BlockSpec((tm, hid), lambda i, j: (i, 0)),
                scratch_shapes=[pltpu.VMEM((tm, hid), jnp.float32)],
            )
            dims = ("parallel", "arbitrary")

        out = pl.pallas_call(
            kernel,
            out_shape=jax.ShapeDtypeStruct((M, hid), odt),
            grid_spec=grid_spec,
            compiler_params=pltpu.CompilerParams(
                dimension_semantics=dims,
                vmem_limit_bytes=int(budget)),
            cost_estimate=cost,
        )(x2d, w1c, b1c, w2c, b2c)
        return out.reshape(batch, seq, hid)

    return apply


# ------------------------------- test ----------------------------------------

if __name__ == "__main__":
    # small shapes consistent with the module
    batch, seq = 2, 8
    hid_dim, pf_dim = 32, 64
    dropout = 0.1  # identity at inference

    key = jax.random.PRNGKey(0)
    kx, kw1, kb1, kw2, kb2 = jax.random.split(key, 5)

    x = jax.random.normal(kx, (batch, seq, hid_dim), dtype=jnp.float32)
    w1 = jax.random.uniform(kw1, (hid_dim, pf_dim), jnp.float32,
                            -1.0 / hid_dim ** 0.5, 1.0 / hid_dim ** 0.5)
    b1 = jax.random.uniform(kb1, (pf_dim,), jnp.float32,
                            -1.0 / hid_dim ** 0.5, 1.0 / hid_dim ** 0.5)
    w2 = jax.random.uniform(kw2, (pf_dim, hid_dim), jnp.float32,
                            -1.0 / pf_dim ** 0.5, 1.0 / pf_dim ** 0.5)
    b2 = jax.random.uniform(kb2, (hid_dim,), jnp.float32,
                            -1.0 / pf_dim ** 0.5, 1.0 / pf_dim ** 0.5)

    # Reference matching the kernel arithmetic (bf16 matmuls, f32 accumulate).
    def ref_bf16(x, w1, b1, w2, b2):
        xb, w1b, w2b = (a.astype(jnp.bfloat16) for a in (x, w1, w2))
        h = jnp.maximum(jnp.einsum("bsh,hp->bsp", xb, w1b,
                                   preferred_element_type=jnp.float32) + b1, 0.0)
        return jnp.einsum("bsp,ph->bsh", h.astype(jnp.bfloat16), w2b,
                          preferred_element_type=jnp.float32) + b2

    # 1) Default plan: resident fast path (n_pf == 1, no accumulator scratch).
    ffn = make_positionwise_feedforward(w1, b1, w2, b2)
    y = jax.block_until_ready(ffn(x))
    assert y.shape == (batch, seq, hid_dim) and y.dtype == x.dtype
    assert jnp.allclose(y, ref_bf16(x, w1, b1, w2, b2), atol=5e-3, rtol=5e-3)
    ref_f32 = jnp.maximum(x @ w1 + b1, 0.0) @ w2 + b2
    assert jnp.allclose(y, ref_f32, atol=5e-2, rtol=5e-2)

    # 2) Streamed path smoke test: awkward pf (192) forced onto tpf=128 so the
    #    pf axis is zero-padded to 256 and reduced over 2 grid steps.
    pf2 = 192
    kw1b, kb1b, kw2b = jax.random.split(kw2, 3)
    w1s = jax.random.uniform(kw1b, (hid_dim, pf2), jnp.float32, -0.1, 0.1)
    b1s = jax.random.uniform(kb1b, (pf2,), jnp.float32, -0.1, 0.1)
    w2s = jax.random.uniform(kw2b, (pf2, hid_dim), jnp.float32, -0.1, 0.1)
    ffn_s = make_positionwise_feedforward(w1s, b1s, w2s, b2,
                                          force_tiles=(256, 128, False))
    ys = jax.block_until_ready(ffn_s(x))
    assert jnp.allclose(ys, ref_bf16(x, w1s, b1s, w2s, b2), atol=5e-3, rtol=5e-3)

    print("KERNEL_OK")
</pallas_src>

<mosaic_0001>
module attributes {stable_mosaic.version = 11 : i64} {
  func.func @ffn_kernel_resident(%arg0: i32, %arg1: memref<8x32xbf16, #tpu.memory_space<vmem>>, %arg2: memref<32x64xbf16, #tpu.memory_space<vmem>>, %arg3: memref<1x64xf32, #tpu.memory_space<vmem>>, %arg4: memref<64x32xbf16, #tpu.memory_space<vmem>>, %arg5: memref<1x32xf32, #tpu.memory_space<vmem>>, %arg6: memref<8x32xf32, #tpu.memory_space<vmem>>) attributes {dimension_semantics = [#tpu.dimension_semantics<parallel>], iteration_bounds = array<i64: 2>, scalar_prefetch = 0 : i64, scratch_operands = 0 : i64, tpu.core_type = #tpu.core_type<tc>, window_params = [{transform_indices = @transform_0, window_bounds = array<i64: 8, 32>}, {pipeline_mode = #tpu.pipeline_mode<synchronous>, transform_indices = @transform_1, window_bounds = array<i64: 32, 64>}, {pipeline_mode = #tpu.pipeline_mode<synchronous>, transform_indices = @transform_2, window_bounds = array<i64: 1, 64>}, {pipeline_mode = #tpu.pipeline_mode<synchronous>, transform_indices = @transform_3, window_bounds = array<i64: 64, 32>}, {pipeline_mode = #tpu.pipeline_mode<synchronous>, transform_indices = @transform_4, window_bounds = array<i64: 1, 32>}, {transform_indices = @transform_5, window_bounds = array<i64: 8, 32>}]} {
    %c0 = arith.constant 0 : index
    %c0_0 = arith.constant 0 : index
    %0 = vector.load %arg1[%c0, %c0_0] : memref<8x32xbf16, #tpu.memory_space<vmem>>, vector<8x32xbf16>
    %c0_1 = arith.constant 0 : index
    %c0_2 = arith.constant 0 : index
    %1 = vector.load %arg2[%c0_1, %c0_2] : memref<32x64xbf16, #tpu.memory_space<vmem>>, vector<32x64xbf16>
    %cst = arith.constant dense<0.000000e+00> : vector<8x64xf32>
    %2 = tpu.matmul %0, %1, %cst {dimension_numbers = #tpu.dot_dimension_numbers<[1], [0], [0], [1], [0, 0, 1, 1], [], []>} : vector<8x32xbf16>, vector<32x64xbf16>, vector<8x64xf32> -> vector<8x64xf32>
    %c0_3 = arith.constant 0 : index
    %c0_4 = arith.constant 0 : index
    %3 = vector.load %arg3[%c0_3, %c0_4] : memref<1x64xf32, #tpu.memory_space<vmem>>, vector<1x64xf32>
    %4 = vector.broadcast %3 : vector<1x64xf32> to vector<8x64xf32>
    %5 = arith.addf %2, %4 : vector<8x64xf32>
    %cst_5 = arith.constant 0.000000e+00 : f32
    %6 = vector.broadcast %cst_5 : f32 to vector<8x64xf32>
    %7 = arith.maximumf %5, %6 : vector<8x64xf32>
    %8 = arith.truncf %7 : vector<8x64xf32> to vector<8x64xbf16>
    %c0_6 = arith.constant 0 : index
    %c0_7 = arith.constant 0 : index
    %9 = vector.load %arg4[%c0_6, %c0_7] : memref<64x32xbf16, #tpu.memory_space<vmem>>, vector<64x32xbf16>
    %cst_8 = arith.constant dense<0.000000e+00> : vector<8x32xf32>
    %10 = tpu.matmul %8, %9, %cst_8 {dimension_numbers = #tpu.dot_dimension_numbers<[1], [0], [0], [1], [0, 0, 1, 1], [], []>} : vector<8x64xbf16>, vector<64x32xbf16>, vector<8x32xf32> -> vector<8x32xf32>
    %c0_9 = arith.constant 0 : index
    %c0_10 = arith.constant 0 : index
    %11 = vector.load %arg5[%c0_9, %c0_10] : memref<1x32xf32, #tpu.memory_space<vmem>>, vector<1x32xf32>
    %12 = vector.broadcast %11 : vector<1x32xf32> to vector<8x32xf32>
    %13 = arith.addf %10, %12 : vector<8x32xf32>
    %c0_11 = arith.constant 0 : index
    %c0_12 = arith.constant 0 : index
    %14 = vector.load %arg6[%c0_11, %c0_12] : memref<8x32xf32, #tpu.memory_space<vmem>>, vector<8x32xf32>
    tpu.vector_store %arg6[%c0_11, %c0_12], %13 {strides = array<i32>} : memref<8x32xf32, #tpu.memory_space<vmem>>, vector<8x32xf32>,
    return
  }
  func.func @transform_0(%arg0: i32) -> (i32, i32) {
    %c0_i32 = arith.constant 0 : i32
    %c0_i32_0 = arith.constant 0 : i32
    return %arg0, %c0_i32 : i32, i32
  }
  func.func @transform_1(%arg0: i32) -> (i32, i32) {
    %c0_i32 = arith.constant 0 : i32
    %c0_i32_0 = arith.constant 0 : i32
    %c0_i32_1 = arith.constant 0 : i32
    return %c0_i32, %c0_i32_0 : i32, i32
  }
  func.func @transform_2(%arg0: i32) -> (i32, i32) {
    %c0_i32 = arith.constant 0 : i32
    %c0_i32_0 = arith.constant 0 : i32
    %c0_i32_1 = arith.constant 0 : i32
    return %c0_i32, %c0_i32_0 : i32, i32
  }
  func.func @transform_3(%arg0: i32) -> (i32, i32) {
    %c0_i32 = arith.constant 0 : i32
    %c0_i32_0 = arith.constant 0 : i32
    %c0_i32_1 = arith.constant 0 : i32
    return %c0_i32, %c0_i32_0 : i32, i32
  }
  func.func @transform_4(%arg0: i32) -> (i32, i32) {
    %c0_i32 = arith.constant 0 : i32
    %c0_i32_0 = arith.constant 0 : i32
    %c0_i32_1 = arith.constant 0 : i32
    return %c0_i32, %c0_i32_0 : i32, i32
  }
  func.func @transform_5(%arg0: i32) -> (i32, i32) {
    %c0_i32 = arith.constant 0 : i32
    %c0_i32_0 = arith.constant 0 : i32
    return %arg0, %c0_i32 : i32, i32
  }
}

</mosaic_0001>

<bundles_post_ra>
// kernel: tpu_custom_call.1
= control target key start
LH: loop header
LB: loop body
LE: loop exit
PB: predicated region body
PF: predicated region fallthrough
CT: control target
= control target key end

     0   :  { %10 = vsyncpa [#allocation3], 0  ;;  %s766_s0 = inlined_call_operand.vmem [shape: bf16[16,32], index: 0, kind: input, shape index: {}]   ;;  %s767_s1 = inlined_call_operand.vmem [shape: bf16[32,64], index: 1, kind: input, shape index: {}]   ;;  %s768_s2 = inlined_call_operand.vmem [shape: f32[1,64], index: 2, kind: input, shape index: {}]   ;;  %s769_s3 = inlined_call_operand.vmem [shape: bf16[64,32], index: 3, kind: input, shape index: {}]   ;;  %s770_s4 = inlined_call_operand.vmem [shape: f32[1,32], index: 4, kind: input, shape index: {}]   ;;  %s771_s5 = inlined_call_operand.hbm [shape: f32[16,32], index: 5, kind: output, shape index: {}]  }
   0x1   :  { %12 = vsyncpa [#allocation3 + $0x1], 0  ;;  %s640_s18 = smov 0   ;;  %s642_s19 = smov 0  }
   0x2   :  { %s644_s20 = smov 0   ;;  %s646_s21 = smov 0  }
   0x3 LB: > { %s661_s22 = sadd.s32 4294967295, %s605_s21   ;;  %s448_s23 = sadd.s32 4294967294, %s605_s21   ;;  %s605_s21 = sphi %s646_s21, %s777_s21   ;;  %s601_s20 = sphi %s644_s20, %s776_s20   ;;  %s597_s19 = sphi %s642_s19, %s775_s19   ;;  %s593_s18 = sphi %s640_s18, %s774_s18  }
   0x4   : > { %s665_s24 = sadd.s32 1, %s605_s21   ;;  %s135_s25 = sadd.s32 1, %s601_s20 }
   0x5   : > { %s132_s26 = ssub.s32 %s605_s21, %s665_s24  ;;  %p145_p0 = scmp.ne.s32.totalorder %s601_s20, %s597_s19 }
   0x6   : > { %p133_p1 = scmp.eq.s32.totalorder %s132_s26, 0  ;;  %p146_p2 = scmp.eq.s32.totalorder %s661_s22, 1 }
   0x7   : > { %p151_p3 = scmp.ne.s32.totalorder %s597_s19, %s593_s18  ;;  %p152_p4 = scmp.eq.s32.totalorder %s448_s23, 1 }
   0x8   : > { %s676_s27 = scalar_select %p133_p1, %s601_s20, %s135_s25  }
   0x9   : > { %p678_p5 = por %p146_p2, %p145_p0  ;;  %p682_p6 = por %p152_p4, %p151_p3 }
   0xa   : > { %p451_p7 = scmp.ge.s32.totalorder %s605_s21, 1  ;;  %p189_p8 = scmp.lt.s32.totalorder %s605_s21, 3 }
   0xc   : > { %p190_p9 = pnand %p451_p7, %p189_p8 }
   0xd   : > { %v537_v0 = vld [vmem:[%s767_s1] sm:$0xff] (!%p190_p9)   ;;  %v607_v1 = vmov (!%p190_p9), 0.0   ;;  %v538_v2 = vld [vmem:[%s767_s1 + $0x8] sm:$0xff] (!%p190_p9)   ;;  %vm608_vm0 = vmmov (!%p190_p9), 0   ;;  %p216_p10 = scmp.lt.s32.totalorder (!%p190_p9), %s661_s22, 1  ;;  %vm245_vm1 = vcmask (!%p190_p9), 261120  }
   0xe   : > { %193 = sbr.rel (%p190_p9) target bundleno = 472 (0x1d8), region = 40  ;;  %476 = vmatprep.subr.bf16.mxu0 (!%p190_p9), %v607_v1  ;;  %484 = vmatprep.subr.bf16.mxu1 (!%p190_p9), %v607_v1  ;;  %v539_v3 = vld [vmem:[%s769_s3] sm:$0xff] (!%p190_p9)   ;;  %v540_v4 = vld [vmem:[%s769_s3 + $0x8] sm:$0xff] (!%p190_p9)   ;;  %v541_v6 = vld [vmem:[%s769_s3 + $0x10] sm:$0xff] (!%p190_p9)   ;;  %vm330_vm2 = vcmask (!%p190_p9), 523264   ;;  %s213_s8 = sand.u32 (!%p190_p9), 1, %s597_s19  }
   0xf   : > { %477 = vmatpush3.bf16.msra.mxu0 (!%p190_p9), %v537_v0  ;;  %480 = vmatprep.mubr.msk.bf16.mxu0 (!%p190_p9), %vm608_vm0, %v607_v1  ;;  %v542_v7 = vld [vmem:[%s769_s3 + $0x18] sm:$0xff] (!%p190_p9)   ;;  %v454_v8 = vld [vmem:[%s768_s2] ss:$0 sm:$0xff] (!%p190_p9)  ;;  %s452_s9 = sshll.u32 (!%p190_p9), %s213_s8, 3  ;;  %s465_s12 = sshll.u32 (!%p190_p9), %s661_s22, 7 }
  0x10   : > { %478 = vmatprep.subr.bf16.mxu0 (!%p190_p9), %v607_v1  ;;  %492 = vmatprep.mubr.msk.bf16.mxu1 (!%p190_p9), %vm608_vm0, %v607_v1  ;;  %v458_v16 = vld [vmem:[%s770_s4] ss:$0 sm:$0xff] (!%p190_p9)  ;;  %s215_s13 = scalar_lea.vmem (!%p190_p9), [#allocation2], %s452_s9  ;;  %s609_s25 = smov (!%p190_p9), [#allocation2]  }
  0x11   : > { %485 = vmatpush3.bf16.msra.mxu1 (!%p190_p9), %v539_v3  ;;  %s547_s26 = sshll.u32 (!%p190_p9), %s609_s25, 4  ;;  %s548_s26 = int_to_ptr.vmem [resolvable:$false] %s547_s26 }
  0x12   : > { %486 = vmatprep.subr.bf16.mxu1 (!%p190_p9), %v607_v1  ;;  %s549_s30 = scalar_lea.vmem (!%p190_p9), %s548_s26, 256 }
  0x13   : > { %479 = vmatpush3.bf16.msra.mxu0 (!%p190_p9), %v538_v2 }
  0x15   : > { %s217_s11 = scalar_select %p216_p10, %s661_s22, 1  ;;  %487 = vmatpush3.bf16.msra.mxu1 %v540_v4 }
  0x16   : > { %488 = vmatprep.subr.bf16.mxu1 %v607_v1  ;;  %s376_s22 = scalar_lea.sflag [#allocation3], %s213_s8 }
  0x17   : > { %s453_s14 = sshll.u32 %s217_s11, 2 }
  0x18   : > { %s219_s17 = scalar_lea.vmem %s766_s0, %s453_s14  ;;  %s389_s14 = sshll.u32 %s215_s13, 4  ;;  %s725_s14 = int_to_ptr.vmem [resolvable:$true] %s389_s14 }
  0x19   : > { %v221_v5 = vld [vmem:[%s219_s17] sm:$0xf]  ;;  %489 = vmatpush3.bf16.msra.mxu1 %v541_v6  ;;  %s723_s17 = scalar_lea.hbm %s771_s5, %s465_s12  ;;  %s543_s23 = scalar_lea.vmem %s725_s14, 128 }
  0x1a   : > { %481 = vmatmul.mubr.msk.bf16.vlgmr.msra.gmra.mrb[0].mxu0 %vm245_vm1, %v221_v5  ;;  %490 = vmatprep.subr.bf16.mxu1 %v607_v1  ;;  %p544_p11 = scmp.ne.s32.totalorder %s725_s14, %s543_s23  ;;  %p550_p0 = scmp.lt.s32.totalorder %s725_s14, %s548_s26 }
  0x1b   : > { %p551_p1 = scmp.lt.s32.totalorder %s549_s30, %s543_s23 }
  0x1c   : > { %p545_p12 = pnand %p544_p11, %p678_p5 }
  0x1d   : > { %491 = vmatpush3.bf16.msra.mxu1 %v542_v7  ;;  %p552_p2 = por %p551_p1, %p550_p0 }
  0x1e   : > { %p546_p13 = pneg %p545_p12 }
  0x20   : > { %p553_p3 = pnand %p552_p2, %p546_p13 }
  0xed   : > { %v283_v9 = vpop.f32.mrb[0].mxu0 }
  0xee   : > { %v284_v10 = vadd.f32 %v454_v8, %v283_v9  ;;  %v482_v11 = vpop.f32.mrb[1].mxu0 }
  0xef   : > { %v286_v12 = vpop.f32.mrb[2].mxu0 }
  0xf0   : > { %v289_v13 = vmax.f32 %v284_v10, 0.0  ;;  %v483_v14 = vpop.f32.mrb[3].mxu0 }
  0xf2   : > { %v290_v15 = vpack.c.bf16 %v289_v13, %v289_v13 }
  0xf4   : > { %493 = vmatmul.mubr.msk.bf16.vlgmr.msra.gmra.mrb[0].mxu1 %vm330_vm2, %v290_v15 }
 0x1c7   : > { %v368_v17 = vpop.f32.mrb[0].mxu1 }
 0x1c8   : > { %v369_v18 = vadd.f32 %v458_v16, %v368_v17  ;;  %v494_v19 = vpop.f32.mrb[1].mxu1 }
 0x1c9   : > { %v371_v20 = vpop.f32.mrb[2].mxu1 }
 0x1ca   : > { %v495_v21 = vpop.f32.mrb[3].mxu1  ;;  %374 = vst.msk [vmem:[%s215_s13] sm:$0xff] %vm245_vm1, %v369_v18 }
 0x1cb   : > { %556 = shalt.err (!%p553_p3)
}
 0x1cc   : > { %s557_s6 = scalar_lea.hbm %s723_s17, 128  ;;  %s561_s9 = scalar_lea.hbm %s771_s5, 256 }
 0x1cd   : > { %p558_p4 = scmp.ne.s32.totalorder %s723_s17, %s557_s6  ;;  %p562_p9 = scmp.lt.u32.totalorder %s723_s17, %s771_s5 }
 0x1ce   : > { %p563_p10 = scmp.lt.u32.totalorder %s561_s9, %s557_s6  ;;  %p565_p12 = scmp.lt.u32.totalorder %s557_s6, %s723_s17 }
 0x1cf   : > { %p559_p7 = pnand %p558_p4, %p678_p5 }
 0x1d0   : > { %p564_p11 = por %p563_p10, %p562_p9 }
 0x1d1   : > { %p560_p8 = pneg %p559_p7 }
 0x1d2   : > { %p566_p13 = por %p565_p12, %p564_p11 }
 0x1d4   : > { %p567_p0 = pnand %p566_p13, %p560_p8 }
 0x1d6   : > { %570 = shalt.err (!%p567_p0)
}
 0x1d7   : > { %496 = dma.vmem_to_hbm [thread:$0]  (%p678_p5), %s725_s14, 128, %s723_s17, %s376_s22  }
 0x1d8 PF: > { %p502_p1 = scmp.ge.s32.totalorder %s605_s21, 2  ;;  %s401_s12 = sand.u32 1, %s593_s18  }
 0x1d9   : > { %s402_s13 = scalar_lea.sflag [#allocation3], %s401_s12 }
 0x1da   : > { %p499_p2 = pnand %p502_p1, %p682_p6 }
 0x1dc   : > { %588 = dma.done.wait (!%p499_p2), %s402_s13, 128  }
 0x1dd   : > { %590 = vsyncadd (!%p499_p2), %s402_s13, 4294967168  ;;  %p15_p3 = scmp.ge.s32.totalorder %s665_s24, 4   ;;  %s774_s18 = smov %s597_s19 }
 0x1de   : > { %s775_s19 = smov %s601_s20  ;;  %s776_s20 = smov %s676_s27 }
 0x1df   : > { %s777_s21 = smov %s665_s24  ;;  %17 = sbr.rel (!%p15_p3) target bundleno = 3 (0x3), region = 75 }
 0x1e6   :  { %407 = vsyncpa [#allocation3], 1 }
 0x1e7   :  { %409 = vsyncpa [#allocation3 + $0x1], 1 }

</bundles_post_ra>
